<compile_context>
chip_gen: v6e
topology: v6e:2x2x1
jax: 0.10.0
libtpu: 0.0.40
codegen_flags: <defaults>
</compile_context>

<pallas_src>
import functools
import math

import jax
import jax.numpy as jnp
from jax.experimental import pallas as pl
from jax.experimental.pallas import tpu as pltpu

HIDDEN = 128  # layer1_size = layer2_size = value/advantage hidden width (module defaults)


# ----------------------------------------------------------------------------- kernels

def _compute_va(x_ref, w_in_ref, w_out_ref, b_ref):
    """Shared trunk. Returns lane-dense (rows, 128) f32 slab:
       lanes 0..A-1 = advantage, lane A = MXU advantage row-sum, lane A+1 = value."""
    bf16 = jnp.bfloat16
    hid = x_ref.shape[1]                                  # 128

    x = x_ref[...]                                        # (rows, 128) bf16
    w1 = w_in_ref[:, 0:hid]                               # (128, 128)
    w2 = w_in_ref[:, hid:2 * hid]                         # (128, 128)
    w_va1 = w_in_ref[:, 2 * hid:4 * hid]                  # (128, 256) = [wv1 | wa1]

    b = b_ref[...]                                        # (4, 256) f32
    b1 = b[0:1, 0:hid]
    b2 = b[1:2, 0:hid]
    b_va1 = b[2:3, :]
    b_va2 = b[3:4, 0:hid]                                 # [ba2 | sum(ba2) | bv2 | 0...]

    h1 = jnp.maximum(
        jnp.dot(x, w1, preferred_element_type=jnp.float32) + b1, 0.0)
    h2 = jnp.maximum(
        jnp.dot(h1.astype(bf16), w2, preferred_element_type=jnp.float32) + b2, 0.0)
    # Fused value/advantage hidden layer: one N=256 matmul instead of two N=128.
    hva = jnp.maximum(
        jnp.dot(h2.astype(bf16), w_va1, preferred_element_type=jnp.float32) + b_va1, 0.0)
    # Fused block-diagonal output layer (256 -> 128 lanes).
    va = jnp.dot(hva.astype(bf16), w_out_ref[...],
                 preferred_element_type=jnp.float32) + b_va2                         # (rows, 128)
    return va


def dueling_q_fused_kernel(x_ref, w_in_ref, w_out_ref, b_ref, q_ref, *, a, inv_n):
    """Gridless path: whole batch in one block; mean + combine done in-kernel."""
    va = _compute_va(x_ref, w_in_ref, w_out_ref, b_ref)           # (B, 128) f32
    adv_sum = jnp.sum(va[:, a:a + 1])                             # sublane-only reduce of MXU sum column
    value = va[:, a + 1:a + 2]                                    # (B, 1)
    # Lane-dense store: lanes 0..A-1 hold q; other lanes are don't-care (sliced off in wrapper).
    q_ref[...] = (va + (value - adv_sum * inv_n)).astype(q_ref.dtype)


def va_slab_kernel(x_ref, w_in_ref, w_out_ref, b_ref, va_ref):
    """Gridded pass 1: per-tile value/advantage/advantage-row-sum slab (lane dense)."""
    va_ref[...] = _compute_va(x_ref, w_in_ref, w_out_ref, b_ref).astype(va_ref.dtype)


def combine_kernel(mean_ref, va_ref, q_ref, *, a):
    """Gridded pass 2: q = value + advantage - global_mean (scalar mean arrives via SMEM)."""
    va = va_ref[...]                                              # (bm, 128) f32
    value = va[:, a + 1:a + 2]                                    # (bm, 1)
    q_ref[...] = (va + (value - mean_ref[0, 0])).astype(q_ref.dtype)


# ----------------------------------------------------------------------------- packing & wrapper

def pack_params(params, state_len, action_len, hidden=HIDDEN):
    """Pack the 12 PyTorch-style parameters into 3 slabs (bf16 weights, f32 biases)."""
    a = action_len
    # w1 rows padded state_len -> hidden with zeros (x features are zero-padded to match).
    w1_pad = jnp.zeros((hidden, hidden), jnp.float32).at[:state_len, :].set(params["w1"])
    w_va1 = jnp.concatenate([params["wv1"], params["wa1"]], axis=1)                  # (128, 256)
    w_in = jnp.concatenate([w1_pad, params["w2"], w_va1], axis=1).astype(jnp.bfloat16)  # (128, 512)

    # Block-diagonal output weight, lane-padded to 128 output columns.
    #   rows 0..127  = value half of hva (wv1 branch);  rows 128..255 = advantage half (wa1 branch)
    #   lane 0..A-1  = Wa2;  lane A = row-sum of Wa2 columns;  lane A+1 = Wv2
    w_out = jnp.zeros((2 * hidden, hidden), jnp.float32)
    w_out = w_out.at[hidden:, 0:a].set(params["wa2"])
    w_out = w_out.at[hidden:, a].set(jnp.sum(params["wa2"], axis=1))
    w_out = w_out.at[:hidden, a + 1].set(params["wv2"][:, 0])
    w_out = w_out.astype(jnp.bfloat16)                                               # (256, 128)

    biases = jnp.zeros((4, 2 * hidden), jnp.float32)
    biases = biases.at[0, :hidden].set(params["b1"][0])
    biases = biases.at[1, :hidden].set(params["b2"][0])
    biases = biases.at[2, :].set(jnp.concatenate([params["bv1"][0], params["ba1"][0]]))
    biases = biases.at[3, 0:a].set(params["ba2"][0])
    biases = biases.at[3, a].set(jnp.sum(params["ba2"]))
    biases = biases.at[3, a + 1].set(params["bv2"][0, 0])                            # (4, 256)

    return dict(w_in=w_in, w_out=w_out, biases=biases,
                action_len=a, state_len=state_len, hidden=hidden)


def dueling_qnetwork_forward(x, packed, *, batch_tile=512):
    """Dueling Q-Network forward pass. Small batches use one fused gridless kernel;
    large batches use a parallel batch grid (weights resident) + cross-tile mean finalize."""
    batch = x.shape[0]
    state_len = packed["state_len"]
    hidden = packed["hidden"]
    a = packed["action_len"]
    w_in, w_out, biases = packed["w_in"], packed["w_out"], packed["biases"]

    vmem = pl.BlockSpec(memory_space=pltpu.MemorySpace.VMEM)

    if batch <= batch_tile:
        # ---- single-block fused path (typical RL agent batch sizes) -------------
        x_pad = jnp.zeros((batch, hidden), jnp.bfloat16).at[:, :state_len].set(
            x.astype(jnp.bfloat16))
        q_slab = pl.pallas_call(
            functools.partial(dueling_q_fused_kernel, a=a, inv_n=1.0 / (batch * a)),
            out_shape=jax.ShapeDtypeStruct((batch, hidden), jnp.float32),
            in_specs=[vmem] * 4,
            out_specs=vmem,
        )(x_pad, w_in, w_out, biases)
        return q_slab[:, :a]

    # ---- gridded path: parallel batch tiles ------------------------------------
    n_tiles = pl.cdiv(batch, batch_tile)
    pad_b = n_tiles * batch_tile
    x_pad = jnp.zeros((pad_b, hidden), jnp.bfloat16).at[:batch, :state_len].set(
        x.astype(jnp.bfloat16))

    # Pass 1: lane-dense va slab (adv | adv-row-sum | value) per batch tile.
    va_slab = pl.pallas_call(
        va_slab_kernel,
        grid=(n_tiles,),
        in_specs=[
            pl.BlockSpec((batch_tile, hidden), lambda i: (i, 0)),
            pl.BlockSpec(w_in.shape, lambda i: (0, 0)),      # weights resident
            pl.BlockSpec(w_out.shape, lambda i: (0, 0)),
            pl.BlockSpec(biases.shape, lambda i: (0, 0)),
        ],
        out_specs=pl.BlockSpec((batch_tile, hidden), lambda i: (i, 0)),
        out_shape=jax.ShapeDtypeStruct((pad_b, hidden), jnp.float32),
        compiler_params=pltpu.CompilerParams(dimension_semantics=("parallel",)),
    )(x_pad, w_in, w_out, biases)

    # Cross-tile finalize: GLOBAL advantage mean over the *real* batch rows only
    # (padding rows must not contribute). The MXU already produced per-row adv sums.
    adv_mean = jnp.sum(va_slab[:batch, a]) * (1.0 / (batch * a))
    mean_arr = jnp.reshape(adv_mean, (1, 1)).astype(jnp.float32)

    # Pass 2: q = value + adv - mean, lane-dense output.
    q_slab = pl.pallas_call(
        functools.partial(combine_kernel, a=a),
        grid=(n_tiles,),
        in_specs=[
            pl.BlockSpec(memory_space=pltpu.MemorySpace.SMEM),   # scalar mean
            pl.BlockSpec((batch_tile, hidden), lambda i: (i, 0)),
        ],
        out_specs=pl.BlockSpec((batch_tile, hidden), lambda i: (i, 0)),
        out_shape=jax.ShapeDtypeStruct((pad_b, hidden), jnp.float32),
        compiler_params=pltpu.CompilerParams(dimension_semantics=("parallel",)),
    )(mean_arr, va_slab)
    return q_slab[:batch, :a]


# ----------------------------------------------------------------------------- init & references

def init_linear(key, in_dim, out_dim):
    """PyTorch-style uniform init; weight stored as [in, out] (pre-transposed)."""
    kw, kb = jax.random.split(key)
    bound = 1.0 / math.sqrt(in_dim)
    w = jax.random.uniform(kw, (in_dim, out_dim), jnp.float32, -bound, bound)
    b = jax.random.uniform(kb, (1, out_dim), jnp.float32, -bound, bound)
    return w, b


def init_params(seed, state_len, action_len, layer1_size=HIDDEN, layer2_size=HIDDEN):
    keys = jax.random.split(jax.random.PRNGKey(seed), 6)
    w1, b1 = init_linear(keys[0], state_len, layer1_size)
    w2, b2 = init_linear(keys[1], layer1_size, layer2_size)
    wv1, bv1 = init_linear(keys[2], layer2_size, 128)
    wv2, bv2 = init_linear(keys[3], 128, 1)
    wa1, ba1 = init_linear(keys[4], layer2_size, 128)
    wa2, ba2 = init_linear(keys[5], 128, action_len)
    return dict(w1=w1, b1=b1, w2=w2, b2=b2,
                wv1=wv1, bv1=bv1, wv2=wv2, bv2=bv2,
                wa1=wa1, ba1=ba1, wa2=wa2, ba2=ba2)


def reference_forward_f32(x, p):
    """Pure-JAX f32 reference (the original module semantics)."""
    h1 = jax.nn.relu(x @ p["w1"] + p["b1"])
    h2 = jax.nn.relu(h1 @ p["w2"] + p["b2"])
    value = jax.nn.relu(h2 @ p["wv1"] + p["bv1"]) @ p["wv2"] + p["bv2"]
    adv = jax.nn.relu(h2 @ p["wa1"] + p["ba1"]) @ p["wa2"] + p["ba2"]
    return value + (adv - jnp.mean(adv))


def reference_forward_bf16(x, p):
    """Reference with the same bf16-operand / f32-accumulation treatment as the kernel."""
    bf16, f32 = jnp.bfloat16, jnp.float32

    def lin(h, w, b):
        return jnp.dot(h.astype(bf16), w.astype(bf16), preferred_element_type=f32) + b

    h1 = jax.nn.relu(lin(x, p["w1"], p["b1"]))
    h2 = jax.nn.relu(lin(h1, p["w2"], p["b2"]))
    value = lin(jax.nn.relu(lin(h2, p["wv1"], p["bv1"])), p["wv2"], p["bv2"])
    adv = lin(jax.nn.relu(lin(h2, p["wa1"], p["ba1"])), p["wa2"], p["ba2"])
    return value + (adv - jnp.mean(adv))


if __name__ == "__main__":
    state_len, action_len = 8, 4
    params = init_params(seed=0, state_len=state_len, action_len=action_len)
    packed = pack_params(params, state_len=state_len, action_len=action_len)

    # --- small batch (B=2): single fused gridless kernel ---------------------
    x_small = jax.random.normal(jax.random.PRNGKey(0), (2, state_len), jnp.float32)
    q_small = jax.block_until_ready(dueling_qnetwork_forward(x_small, packed))
    assert q_small.shape == (2, action_len)
    q_ref_bf16 = reference_forward_bf16(x_small, params)
    q_ref_f32 = reference_forward_f32(x_small, params)
    assert jnp.allclose(q_small, q_ref_bf16, atol=1e-3, rtol=1e-3), (q_small, q_ref_bf16)
    assert jnp.allclose(q_small, q_ref_f32, atol=1e-1, rtol=1e-1), (q_small, q_ref_f32)

    # --- larger batch (B=700, not a tile multiple): parallel batch grid +
    #     cross-tile global-mean finalize ------------------------------------
    x_big = jax.random.normal(jax.random.PRNGKey(1), (700, state_len), jnp.float32)
    q_big = jax.block_until_ready(dueling_qnetwork_forward(x_big, packed, batch_tile=512))
    assert q_big.shape == (700, action_len)
    q_big_ref = reference_forward_bf16(x_big, params)
    assert jnp.allclose(q_big, q_big_ref, atol=1e-3, rtol=1e-3), (q_big, q_big_ref)

    print("KERNEL_OK")
</pallas_src>

<mosaic_0001>
module attributes {stable_mosaic.version = 11 : i64} {
  func.func @dueling_q_fused_kernel(%arg0: memref<2x128xbf16, #tpu.memory_space<vmem>>, %arg1: memref<128x512xbf16, #tpu.memory_space<vmem>>, %arg2: memref<256x128xbf16, #tpu.memory_space<vmem>>, %arg3: memref<4x256xf32, #tpu.memory_space<vmem>>, %arg4: memref<2x128xf32, #tpu.memory_space<vmem>>) attributes {dimension_semantics = [], scalar_prefetch = 0 : i64, scratch_operands = 0 : i64, tpu.core_type = #tpu.core_type<tc>} {
    %c0 = arith.constant 0 : index
    %c0_0 = arith.constant 0 : index
    %0 = vector.load %arg0[%c0, %c0_0] : memref<2x128xbf16, #tpu.memory_space<vmem>>, vector<2x128xbf16>
    %c0_1 = arith.constant 0 : index
    %c0_2 = arith.constant 0 : index
    %1 = vector.load %arg1[%c0_1, %c0_2] : memref<128x512xbf16, #tpu.memory_space<vmem>>, vector<128x128xbf16>
    %c0_3 = arith.constant 0 : index
    %c128 = arith.constant 128 : index
    %2 = vector.load %arg1[%c0_3, %c128] : memref<128x512xbf16, #tpu.memory_space<vmem>>, vector<128x128xbf16>
    %c0_4 = arith.constant 0 : index
    %c256 = arith.constant 256 : index
    %3 = vector.load %arg1[%c0_4, %c256] : memref<128x512xbf16, #tpu.memory_space<vmem>>, vector<128x256xbf16>
    %c0_5 = arith.constant 0 : index
    %c0_6 = arith.constant 0 : index
    %4 = vector.load %arg3[%c0_5, %c0_6] : memref<4x256xf32, #tpu.memory_space<vmem>>, vector<4x256xf32>
    %5 = vector.extract_strided_slice %4 {offsets = [0, 0], sizes = [1, 128], strides = [1, 1]} : vector<4x256xf32> to vector<1x128xf32>
    %6 = vector.extract_strided_slice %4 {offsets = [1, 0], sizes = [1, 128], strides = [1, 1]} : vector<4x256xf32> to vector<1x128xf32>
    %7 = vector.extract_strided_slice %4 {offsets = [2, 0], sizes = [1, 256], strides = [1, 1]} : vector<4x256xf32> to vector<1x256xf32>
    %8 = vector.extract_strided_slice %4 {offsets = [3, 0], sizes = [1, 128], strides = [1, 1]} : vector<4x256xf32> to vector<1x128xf32>
    %cst = arith.constant dense<0.000000e+00> : vector<2x128xf32>
    %9 = tpu.matmul %0, %1, %cst {dimension_numbers = #tpu.dot_dimension_numbers<[1], [0], [0], [1], [0, 0, 1, 1], [], []>} : vector<2x128xbf16>, vector<128x128xbf16>, vector<2x128xf32> -> vector<2x128xf32>
    %10 = vector.broadcast %5 : vector<1x128xf32> to vector<2x128xf32>
    %11 = arith.addf %9, %10 : vector<2x128xf32>
    %cst_7 = arith.constant 0.000000e+00 : f32
    %12 = vector.broadcast %cst_7 : f32 to vector<2x128xf32>
    %13 = arith.maximumf %11, %12 : vector<2x128xf32>
    %14 = arith.truncf %13 : vector<2x128xf32> to vector<2x128xbf16>
    %cst_8 = arith.constant dense<0.000000e+00> : vector<2x128xf32>
    %15 = tpu.matmul %14, %2, %cst_8 {dimension_numbers = #tpu.dot_dimension_numbers<[1], [0], [0], [1], [0, 0, 1, 1], [], []>} : vector<2x128xbf16>, vector<128x128xbf16>, vector<2x128xf32> -> vector<2x128xf32>
    %16 = vector.broadcast %6 : vector<1x128xf32> to vector<2x128xf32>
    %17 = arith.addf %15, %16 : vector<2x128xf32>
    %cst_9 = arith.constant 0.000000e+00 : f32
    %18 = vector.broadcast %cst_9 : f32 to vector<2x128xf32>
    %19 = arith.maximumf %17, %18 : vector<2x128xf32>
    %20 = arith.truncf %19 : vector<2x128xf32> to vector<2x128xbf16>
    %cst_10 = arith.constant dense<0.000000e+00> : vector<2x256xf32>
    %21 = tpu.matmul %20, %3, %cst_10 {dimension_numbers = #tpu.dot_dimension_numbers<[1], [0], [0], [1], [0, 0, 1, 1], [], []>} : vector<2x128xbf16>, vector<128x256xbf16>, vector<2x256xf32> -> vector<2x256xf32>
    %22 = vector.broadcast %7 : vector<1x256xf32> to vector<2x256xf32>
    %23 = arith.addf %21, %22 : vector<2x256xf32>
    %cst_11 = arith.constant 0.000000e+00 : f32
    %24 = vector.broadcast %cst_11 : f32 to vector<2x256xf32>
    %25 = arith.maximumf %23, %24 : vector<2x256xf32>
    %26 = arith.truncf %25 : vector<2x256xf32> to vector<2x256xbf16>
    %c0_12 = arith.constant 0 : index
    %c0_13 = arith.constant 0 : index
    %27 = vector.load %arg2[%c0_12, %c0_13] : memref<256x128xbf16, #tpu.memory_space<vmem>>, vector<256x128xbf16>
    %cst_14 = arith.constant dense<0.000000e+00> : vector<2x128xf32>
    %28 = tpu.matmul %26, %27, %cst_14 {dimension_numbers = #tpu.dot_dimension_numbers<[1], [0], [0], [1], [0, 0, 1, 1], [], []>} : vector<2x256xbf16>, vector<256x128xbf16>, vector<2x128xf32> -> vector<2x128xf32>
    %29 = vector.broadcast %8 : vector<1x128xf32> to vector<2x128xf32>
    %30 = arith.addf %28, %29 : vector<2x128xf32>
    %31 = vector.extract_strided_slice %30 {offsets = [0, 4], sizes = [2, 1], strides = [1, 1]} : vector<2x128xf32> to vector<2x1xf32>
    %32 = vector.shape_cast %31 : vector<2x1xf32> to vector<1x2x1xf32>
    %cst_15 = arith.constant dense<0.000000e+00> : vector<1xf32>
    %33 = vector.multi_reduction <add>, %32, %cst_15 [1, 2] : vector<1x2x1xf32> to vector<1xf32>
    %34 = vector.shape_cast %33 : vector<1xf32> to vector<1x1x1xf32>
    %35 = vector.extract %34[0, 0, 0] : f32 from vector<1x1x1xf32>
    %36 = vector.extract_strided_slice %30 {offsets = [0, 5], sizes = [2, 1], strides = [1, 1]} : vector<2x128xf32> to vector<2x1xf32>
    %cst_16 = arith.constant 1.250000e-01 : f32
    %37 = arith.mulf %35, %cst_16 : f32
    %38 = vector.broadcast %37 : f32 to vector<2x1xf32>
    %39 = arith.subf %36, %38 : vector<2x1xf32>
    %40 = vector.broadcast %39 : vector<2x1xf32> to vector<2x128xf32>
    %41 = arith.addf %30, %40 : vector<2x128xf32>
    %c0_17 = arith.constant 0 : index
    %c0_18 = arith.constant 0 : index
    %42 = vector.load %arg4[%c0_17, %c0_18] : memref<2x128xf32, #tpu.memory_space<vmem>>, vector<2x128xf32>
    tpu.vector_store %arg4[%c0_17, %c0_18], %41 {strides = array<i32>} : memref<2x128xf32, #tpu.memory_space<vmem>>, vector<2x128xf32>,
    return
  }
}

</mosaic_0001>

<bundles_post_ra>
// kernel: tpu_custom_call.1
= control target key start
LH: loop header
LB: loop body
LE: loop exit
PB: predicated region body
PF: predicated region fallthrough
CT: control target
= control target key end

     0   :  { %9 = vsyncpa [#allocation3], 0  ;;  %s1044_s0 = inlined_call_operand.hbm [shape: bf16[2,128], index: 0, kind: input, shape index: {}]   ;;  %s1045_s1 = inlined_call_operand.hbm [shape: bf16[128,512], index: 1, kind: input, shape index: {}]   ;;  %s1046_s2 = inlined_call_operand.hbm [shape: bf16[256,128], index: 2, kind: input, shape index: {}]   ;;  %s1047_s3 = inlined_call_operand.hbm [shape: f32[4,256], index: 3, kind: input, shape index: {}]   ;;  %s1048_s4 = inlined_call_operand.hbm [shape: f32[2,128], index: 4, kind: output, shape index: {}]  }
   0x1   :  { %10 = vsyncpa [#allocation6], 0 }
   0x2   :  { %11 = vsyncpa [#allocation9], 0 }
   0x3   :  { %12 = vsyncpa [#allocation4], 0  ;;  %s976_s15 = smov [#allocation5]  }
   0x4   :  { %s28_s16 = sshll.u32 %s976_s15, 4  ;;  %s29_s16 = int_to_ptr.vmem [resolvable:$true] %s28_s16 }
   0x5   :  { %s876_s17 = scalar_lea.vmem %s29_s16, 4096  ;;  %p881_p1 = scmp.lt.s32.totalorder %s29_s16, %s29_s16 }
   0x6   :  { %p877_p0 = scmp.ne.s32.totalorder %s29_s16, %s876_s17  ;;  %p882_p2 = scmp.lt.s32.totalorder %s876_s17, %s876_s17 }
   0x8   :  { %p883_p3 = por %p882_p2, %p881_p1 }
   0xa   :  { %p884_p4 = pnand %p883_p3, %p877_p0 }
   0xc   :  { %887 = shalt.err (!%p884_p4)
}
   0xd   :  { %s977_s18 = smov 256   ;;  %s978_s19 = smov 16  }
   0xe   :  { %34 = dma.hbm_to_vmem [thread:$0]  %s1045_s1, 4096, %s29_s16, [#allocation6], %s977_s18, %s977_s18, %s978_s19  }
   0xf   :  { %s979_s22 = smov [#allocation2]   ;;  %s980_s24 = smov [#allocation7]  }
  0x10   :  { %s19_s23 = sshll.u32 %s979_s22, 4  ;;  %s40_s25 = sshll.u32 %s980_s24, 4  ;;  %s20_s23 = int_to_ptr.vmem [resolvable:$true] %s19_s23  ;;  %s41_s25 = int_to_ptr.vmem [resolvable:$true] %s40_s25 }
  0x11   :  { %s896_s26 = scalar_lea.vmem %s20_s23, 16  ;;  %s900_s27 = scalar_lea.vmem %s20_s23, 32 }
  0x12   :  { %p897_p5 = scmp.ne.s32.totalorder %s20_s23, %s896_s26  ;;  %p901_p6 = scmp.lt.s32.totalorder %s20_s23, %s20_s23 }
  0x13   :  { %p902_p7 = scmp.lt.s32.totalorder %s900_s27, %s896_s26 }
  0x15   :  { %p903_p8 = por %p902_p7, %p901_p6 }
  0x17   :  { %p904_p9 = pnand %p903_p8, %p897_p5 }
  0x19   :  { %907 = shalt.err (!%p904_p9)
}
  0x1a   :  { %22 = dma.hbm_to_vmem [thread:$0]  %s1044_s0, 16, %s20_s23, [#allocation3]  }
  0x1b   :  { %s916_s30 = scalar_lea.vmem %s41_s25, 2048  ;;  %p921_p11 = scmp.lt.s32.totalorder %s41_s25, %s41_s25 }
  0x1c   :  { %p917_p10 = scmp.ne.s32.totalorder %s41_s25, %s916_s30  ;;  %p922_p12 = scmp.lt.s32.totalorder %s916_s30, %s916_s30 }
  0x1e   :  { %p923_p13 = por %p922_p12, %p921_p11 }
  0x20   :  { %p924_p0 = pnand %p923_p13, %p917_p10 }
  0x22   :  { %927 = shalt.err (!%p924_p0)
}
  0x23   :  { %s981_s1 = smov 64   ;;  %s982_s5 = smov 4  }
  0x24   :  { %46 = dma.hbm_to_vmem [thread:$0]  %s1046_s2, 2048, %s41_s25, [#allocation6], %s981_s1, %s981_s1, %s982_s5  }
  0x25   :  { %s983_s8 = smov [#allocation8]  }
  0x26   :  { %s53_s9 = sshll.u32 %s983_s8, 4  ;;  %s54_s9 = int_to_ptr.vmem [resolvable:$true] %s53_s9 }
  0x27   :  { %s936_s10 = scalar_lea.vmem %s54_s9, 128  ;;  %p941_p2 = scmp.lt.s32.totalorder %s54_s9, %s54_s9 }
  0x28   :  { %p937_p1 = scmp.ne.s32.totalorder %s54_s9, %s936_s10  ;;  %p942_p3 = scmp.lt.s32.totalorder %s936_s10, %s936_s10 }
  0x2a   :  { %p943_p4 = por %p942_p3, %p941_p2 }
  0x2c   :  { %p944_p5 = pnand %p943_p4, %p937_p1 }
  0x2e   :  { %947 = shalt.err (!%p944_p5)
}
  0x2f   :  { %56 = dma.hbm_to_vmem [thread:$0]  %s1047_s3, 128, %s54_s9, [#allocation9]  }
  0x30   :  { %968 = dma.done.wait [#allocation3], 16  }
  0x31   :  { %969 = vsyncadd [#allocation3], 4294967280 }
  0x32   :  { %970 = dma.done.wait [#allocation6], 6144  }
  0x33   :  { %971 = vsyncadd [#allocation6], 4294961152 }
  0x34   :  { %972 = dma.done.wait [#allocation9], 128  }
  0x35   :  { %973 = vsyncadd [#allocation9], 4294967168  ;;  %v984_v0 = vmov 0.0   ;;  %vm985_vm0 = vmmov 0   ;;  %v812_v1 = vld [vmem:[#allocation5 + $0xe0] ss:$16 sps:$4 sm:$0xff]   ;;  %v120_v32 = vlaneseq }
  0x36   :  { %754 = vmatprep.subr.bf16.mxu0 %v984_v0  ;;  %770 = vmatprep.mubr.msk.bf16.mxu0 %vm985_vm0, %v984_v0  ;;  %v813_v2 = vld [vmem:[#allocation5 + $0xc0] ss:$16 sps:$4 sm:$0xff]   ;;  %v820_v4 = vld [vmem:[#allocation5 + $0xe4] ss:$16 sps:$4 sm:$0xff]   ;;  %v70_v15 = vld [vmem:[#allocation2] sm:$0x1] }
  0x37   :  { %774 = vmatprep.subr.bf16.mxu1 %v984_v0  ;;  %790 = vmatprep.mubr.msk.bf16.mxu1 %vm985_vm0, %v984_v0  ;;  %v814_v3 = vld [vmem:[#allocation5 + $0xa0] ss:$16 sps:$4 sm:$0xff]   ;;  %v821_v6 = vld [vmem:[#allocation5 + $0xc4] ss:$16 sps:$4 sm:$0xff]   ;;  %v828_v18 = vld [vmem:[#allocation5 + $0xe8] ss:$16 sps:$4 sm:$0xff]  }
  0x38   :  { %755 = vmatpush3.bf16.msra.mxu0 %v812_v1  ;;  %v815_v5 = vld [vmem:[#allocation5 + $0x80] ss:$16 sps:$4 sm:$0xff]   ;;  %775 = vmatpush3.bf16.msra.mxu1 %v820_v4  ;;  %v822_v8 = vld [vmem:[#allocation5 + $0xa4] ss:$16 sps:$4 sm:$0xff]   ;;  %v830_v19 = vld [vmem:[#allocation5 + $0xec] ss:$16 sps:$4 sm:$0xff]  }
  0x39   :  { %756 = vmatprep.subr.bf16.mxu0 %v984_v0  ;;  %776 = vmatprep.subr.bf16.mxu1 %v984_v0  ;;  %v816_v7 = vld [vmem:[#allocation5 + $0x60] ss:$16 sps:$4 sm:$0xff]   ;;  %v823_v10 = vld [vmem:[#allocation5 + $0x84] ss:$16 sps:$4 sm:$0xff]   ;;  %v833_v20 = vld [vmem:[#allocation5 + $0xcc] ss:$16 sps:$4 sm:$0xff]  }
  0x3a   :  { %v817_v9 = vld [vmem:[#allocation5 + $0x40] ss:$16 sps:$4 sm:$0xff]   ;;  %v824_v12 = vld [vmem:[#allocation5 + $0x64] ss:$16 sps:$4 sm:$0xff]   ;;  %v831_v21 = vld [vmem:[#allocation5 + $0xc8] ss:$16 sps:$4 sm:$0xff]  }
  0x3b   :  { %v818_v11 = vld [vmem:[#allocation5 + $0x20] ss:$16 sps:$4 sm:$0xff]   ;;  %v825_v14 = vld [vmem:[#allocation5 + $0x44] ss:$16 sps:$4 sm:$0xff]   ;;  %v836_v22 = vld [vmem:[#allocation5 + $0xac] ss:$16 sps:$4 sm:$0xff]  }
  0x3c   :  { %757 = vmatpush3.bf16.msra.mxu0 %v813_v2  ;;  %777 = vmatpush3.bf16.msra.mxu1 %v821_v6  ;;  %v819_v13 = vld [vmem:[#allocation5] ss:$16 sps:$4 sm:$0xff]   ;;  %v826_v16 = vld [vmem:[#allocation5 + $0x24] ss:$16 sps:$4 sm:$0xff]   ;;  %v834_v23 = vld [vmem:[#allocation5 + $0xa8] ss:$16 sps:$4 sm:$0xff]  }
  0x3d   :  { %758 = vmatprep.subr.bf16.mxu0 %v984_v0  ;;  %778 = vmatprep.subr.bf16.mxu1 %v984_v0  ;;  %v827_v17 = vld [vmem:[#allocation5 + $0x4] ss:$16 sps:$4 sm:$0xff]   ;;  %v839_v24 = vld [vmem:[#allocation5 + $0x8c] ss:$16 sps:$4 sm:$0xff]   ;;  %v837_v25 = vld [vmem:[#allocation5 + $0x88] ss:$16 sps:$4 sm:$0xff]  }
  0x3e   :  { %v842_v26 = vld [vmem:[#allocation5 + $0x6c] ss:$16 sps:$4 sm:$0xff]   ;;  %v840_v27 = vld [vmem:[#allocation5 + $0x68] ss:$16 sps:$4 sm:$0xff]   ;;  %v1027_v33 = vshrl.u32 %v120_v32, 7  ;;  %v1030_v35 = vld [vmem:[#allocation8] sm:$0xff] }
  0x3f   :  { %v845_v28 = vld [vmem:[#allocation5 + $0x4c] ss:$16 sps:$4 sm:$0xff]   ;;  %v843_v29 = vld [vmem:[#allocation5 + $0x48] ss:$16 sps:$4 sm:$0xff]   ;;  %v986_v46 = vmov 0   ;;  %v854_v49 = vld [vmem:[#allocation7 + $0x70] sm:$0xff]  }
  0x40   :  { %759 = vmatpush3.bf16.msra.mxu0 %v814_v3  ;;  %779 = vmatpush3.bf16.msra.mxu1 %v822_v8  ;;  %v848_v30 = vld [vmem:[#allocation5 + $0x2c] ss:$16 sps:$4 sm:$0xff]   ;;  %v846_v31 = vld [vmem:[#allocation5 + $0x28] ss:$16 sps:$4 sm:$0xff]   ;;  %v122_v34 = vsub.s32 0, %v1027_v33  ;;  %v855_v50 = vld [vmem:[#allocation7 + $0x30] sm:$0xff]  }
  0x41   :  { %760 = vmatprep.subr.bf16.mxu0 %v984_v0  ;;  %780 = vmatprep.subr.bf16.mxu1 %v984_v0  ;;  %v851_v44 = vld [vmem:[#allocation5 + $0xc] ss:$16 sps:$4 sm:$0xff]   ;;  %v849_v45 = vld [vmem:[#allocation5 + $0x8] ss:$16 sps:$4 sm:$0xff]   ;;  %v858_v53 = vld [vmem:[#allocation7 + $0x60] sm:$0xff]   ;;  %v216_v59 = vsub.s32 1, %v1027_v33 }
  0x42   :  { %v123_v36 = vrot.slane %v1030_v35, %v122_v34  ;;  %v852_v47 = vld [vmem:[#allocation7 + $0x78] sm:$0xff]   ;;  %v856_v51 = vld [vmem:[#allocation7 + $0x68] sm:$0xff]   ;;  %v859_v54 = vld [vmem:[#allocation7 + $0x20] sm:$0xff]   ;;  %v311_v8 = vsub.s32 2, %v1027_v33  ;;  %s987_s2 = smov 124   ;;  %vm628_vm1 = vcmask 1024  }
  0x43   :  { %v853_v48 = vld [vmem:[#allocation7 + $0x38] sm:$0xff]   ;;  %v857_v52 = vld [vmem:[#allocation7 + $0x28] sm:$0xff]   ;;  %v862_v57 = vld [vmem:[#allocation7 + $0x50] sm:$0xff]   ;;  %v217_v60 = vrot.slane %v1030_v35, %v216_v59  ;;  %s989_s13 = smov [#allocation10]  }
  0x44   :  { %761 = vmatpush3.bf16.msra.mxu0 %v815_v5  ;;  %781 = vmatpush3.bf16.msra.mxu1 %v823_v10  ;;  %v860_v55 = vld [vmem:[#allocation7 + $0x58] sm:$0xff]   ;;  %v863_v58 = vld [vmem:[#allocation7 + $0x10] sm:$0xff]   ;;  %v864_v4 = vld [vmem:[#allocation7 + $0x48] sm:$0xff]   ;;  %v312_v10 = vrot.slane %v1030_v35, %v311_v8  ;;  %s655_s14 = sshll.u32 %s989_s13, 4  ;;  %s656_s14 = int_to_ptr.vmem [resolvable:$true] %s655_s14 }
  0x45   :  { %762 = vmatprep.subr.bf16.mxu0 %v984_v0  ;;  %782 = vmatprep.subr.bf16.mxu1 %v984_v0  ;;  %v861_v56 = vld [vmem:[#allocation7 + $0x18] sm:$0xff]   ;;  %v865_v5 = vld [vmem:[#allocation7 + $0x8] sm:$0xff]   ;;  %v866_v6 = vld [vmem:[#allocation7 + $0x40] sm:$0xff]   ;;  %s948_s15 = scalar_lea.vmem %s656_s14, 32  ;;  %p953_p7 = scmp.lt.s32.totalorder %s656_s14, %s656_s14 }
  0x46   :  { %p949_p6 = scmp.ne.s32.totalorder %s656_s14, %s948_s15  ;;  %p954_p8 = scmp.lt.s32.totalorder %s948_s15, %s948_s15 }
  0x48   :  { %763 = vmatpush3.bf16.msra.mxu0 %v816_v7  ;;  %783 = vmatpush3.bf16.msra.mxu1 %v824_v12  ;;  %v867_v7 = vld [vmem:[#allocation7] sm:$0xff]   ;;  %v322_v12 = vrot.slane %v312_v10, %v311_v8  ;;  %p955_p9 = por %p954_p8, %p953_p7 }
  0x49   :  { %764 = vmatprep.subr.bf16.mxu0 %v984_v0  ;;  %784 = vmatprep.subr.bf16.mxu1 %v984_v0 }
  0x4a   :  { %p956_p10 = pnand %p955_p9, %p949_p6 }
  0x4c   :  { %765 = vmatpush3.bf16.msra.mxu0 %v817_v9  ;;  %785 = vmatpush3.bf16.msra.mxu1 %v825_v14  ;;  %v315_v9 = vsub.s32 6, %v1027_v33 }
  0x4d   :  { %766 = vmatprep.subr.bf16.mxu0 %v984_v0  ;;  %786 = vmatprep.subr.bf16.mxu1 %v984_v0 }
  0x50   :  { %767 = vmatpush3.bf16.msra.mxu0 %v818_v11  ;;  %787 = vmatpush3.bf16.msra.mxu1 %v826_v16  ;;  %v316_v11 = vrot.slane %v1030_v35, %v315_v9 }
  0x51   :  { %768 = vmatprep.subr.bf16.mxu0 %v984_v0  ;;  %788 = vmatprep.subr.bf16.mxu1 %v984_v0 }
  0x54   :  { %769 = vmatpush3.bf16.msra.mxu0 %v819_v13  ;;  %789 = vmatpush3.bf16.msra.mxu1 %v827_v17  ;;  %v326_v13 = vrot.slane %v316_v11, %v311_v8 }
  0x55   :  { %407 = vmatprep.subr.bf16.mxu0 %v830_v19  ;;  %732 = vmatprep.subr.bf16.mxu1 %v852_v47 }
  0x57   :  { %771 = vmatmul.mubr.bf16.vlgmr.msra.gmra.mxu0 %v70_v15 }
  0x58   :  { %408 = vmatpush1.bf16.msra.mxu0 %v828_v18  ;;  %439 = vmatprep.mubr.bf16.mxu0 %v986_v46 }
  0x59   :  { %409 = vmatprep.subr.bf16.mxu0 %v833_v20 }
  0x5c   :  { %410 = vmatpush1.bf16.msra.mxu0 %v831_v21 }
  0x5d   :  { %411 = vmatprep.subr.bf16.mxu0 %v836_v22 }
  0x60   :  { %412 = vmatpush1.bf16.msra.mxu0 %v834_v23 }
  0x61   :  { %413 = vmatprep.subr.bf16.mxu0 %v839_v24  ;;  %v486_v24 = vsub.s32 3, %v1027_v33 }
  0x64   :  { %414 = vmatpush1.bf16.msra.mxu0 %v837_v25 }
  0x65   :  { %415 = vmatprep.subr.bf16.mxu0 %v842_v26  ;;  %v487_v26 = vrot.slane %v1030_v35, %v486_v24 }
  0x68   :  { %416 = vmatpush1.bf16.msra.mxu0 %v840_v27 }
  0x69   :  { %417 = vmatprep.subr.bf16.mxu0 %v845_v28 }
  0x6c   :  { %418 = vmatpush1.bf16.msra.mxu0 %v843_v29 }
  0x6d   :  { %419 = vmatprep.subr.bf16.mxu0 %v848_v30 }
  0x70   :  { %420 = vmatpush1.bf16.msra.mxu0 %v846_v31 }
  0x71   :  { %421 = vmatprep.subr.bf16.mxu0 %v851_v44 }
  0x74   :  { %422 = vmatpush1.bf16.msra.mxu0 %v849_v45 }
 0x117   :  { %v206_v37 = vpop.f32.mrf.mxu0 }
 0x118   :  { %v207_v38 = vadd.f32 %v206_v37, %v123_v36  ;;  %v988_v36 = vmov 5  }
 0x119   :  { %v772_v39 = vpop.f32.mrf.mxu0  ;;  %810 = vset.pattern.permute.xlu1 %v988_v36  ;;  %811 = vset.pattern.permute.xlu0 %v988_v36 }
 0x11a   :  { %v212_v40 = vmax.f32 %v207_v38, 0.0 }
 0x11b   :  { %v209_v41 = vpop.f32.mrf.mxu0 }
 0x11c   :  { %v213_v42 = vpack.c.bf16 %v212_v40, %v212_v40 }
 0x11d   :  { %v773_v43 = vpop.f32.mrf.mxu0 }
 0x11e   :  { %791 = vmatmul.mubr.bf16.vlgmr.msra.gmra.mxu1 %v213_v42 }
 0x11f   :  { %733 = vmatpush3.bf16.msra.mxu1 %v853_v48 }
 0x120   :  { %734 = vmatprep.subr.bf16.mxu1 %v854_v49 }
 0x123   :  { %735 = vmatpush3.bf16.msra.mxu1 %v855_v50 }
 0x124   :  { %736 = vmatprep.subr.bf16.mxu1 %v856_v51 }
 0x127   :  { %737 = vmatpush3.bf16.msra.mxu1 %v857_v52 }
 0x128   :  { %738 = vmatprep.subr.bf16.mxu1 %v858_v53 }
 0x12b   :  { %739 = vmatpush3.bf16.msra.mxu1 %v859_v54 }
 0x12c   :  { %740 = vmatprep.subr.bf16.mxu1 %v860_v55 }
 0x12f   :  { %741 = vmatpush3.bf16.msra.mxu1 %v861_v56 }
 0x130   :  { %742 = vmatprep.subr.bf16.mxu1 %v862_v57 }
 0x133   :  { %743 = vmatpush3.bf16.msra.mxu1 %v863_v58 }
 0x134   :  { %744 = vmatprep.subr.bf16.mxu1 %v864_v4 }
 0x137   :  { %745 = vmatpush3.bf16.msra.mxu1 %v865_v5 }
 0x138   :  { %746 = vmatprep.subr.bf16.mxu1 %v866_v6 }
 0x13b   :  { %747 = vmatpush3.bf16.msra.mxu1 %v867_v7 }
 0x1de   :  { %v300_v61 = vpop.f32.mrf.mxu1 }
 0x1df   :  { %v301_v62 = vadd.f32 %v300_v61, %v217_v60 }
 0x1e0   :  { %v792_v63 = vpop.f32.mrf.mxu1 }
 0x1e1   :  { %v306_v0 = vmax.f32 %v301_v62, 0.0 }
 0x1e2   :  { %v303_v1 = vpop.f32.mrf.mxu1 }
 0x1e3   :  { %v307_v2 = vpack.c.bf16 %v306_v0, %v306_v0 }
 0x1e4   :  { %v793_v3 = vpop.f32.mrf.mxu1 }
 0x1e5   :  { %440 = vmatmul.mubr.bf16.vlgmr.msra.gmra.mxu0 %v307_v2 }
 0x2a5   :  { %v441_v14 = vpop.f32.mrf.mxu0 }
 0x2a6   :  { %v442_v15 = vadd.f32 %v441_v14, %v322_v12 }
 0x2a7   :  { %v443_v16 = vpop.f32.mrf.mxu0 }
 0x2a8   :  { %v444_v17 = vadd.f32 %v443_v16, %v326_v13  ;;  %v448_v18 = vmax.f32 %v442_v15, 0.0 }
 0x2a9   :  { %v445_v19 = vpop.f32.mrf.mxu0 }
 0x2aa   :  { %v449_v20 = vmax.f32 %v444_v17, 0.0  ;;  %v450_v23 = vpack.c.bf16 %v448_v18, %v448_v18 }
 0x2ab   :  { %v446_v21 = vpop.f32.mrf.mxu0 }
 0x2ac   :  { %v451_v22 = vpack.c.bf16 %v449_v20, %v449_v20 }
 0x2ae   :  { %616 = vmatprep.mubr.bf16.mxu1 %v451_v22 }
 0x2af   :  { %617 = vmatmul.mubr.bf16.vlgmr.msra.gmra.mxu1 %v450_v23 }
 0x36f   :  { %v748_v25 = vpop.f32.mrf.mxu1 }
 0x371   :  { %v749_v27 = vpop.f32.mrf.mxu1 }
 0x372   :  { %v750_v28 = vadd.f32 %v749_v27, %v748_v25 }
 0x373   :  { %v751_v29 = vpop.f32.mrf.mxu1 }
 0x374   :  { %v619_v30 = vadd.f32 %v750_v28, %v487_v26 }
 0x375   :  { %v752_v31 = vpop.f32.mrf.mxu1 }
 0x376   :  { %625 = vrot.lane.b32.xlu0 %v619_v30, %s987_s2 }
 0x3e8   :  { %v626_v32 = vpop.permute.xlu0 %625 }
 0x3e9   :  { %v629_v34 = vsel %vm628_vm1, %v626_v32, 0.0 }
 0x3ea   :  { %630 = vadd.xlane.f32.xlu0 %v629_v34 }
 0x473   :  { %v631_v37 = vpop.xlane.xlu0 %630 }
 0x474   :  { %v632_v38 = vrot.slane %v631_v37, 4 }
 0x476   :  { %v633_v33 = vadd.f32 %v632_v38, %v631_v37 }
 0x478   :  { %v634_v39 = vrot.slane %v633_v33, 2 }
 0x47a   :  { %v635_v40 = vadd.f32 %v634_v39, %v633_v33 }
 0x47c   :  { %v636_v35 = vrot.slane %v635_v40, 1 }
 0x47e   :  { %v637_v41 = vadd.f32 %v636_v35, %v635_v40 }
 0x480   :  { %794 = vpush %v637_v41 }
 0x4b1   :  { %s795_s3 = spop %794 }
 0x4b2   :  { %s639_s12 = smul.f32 0.125, %s795_s3 }
 0x4b4   :  { %v640_v42 = vstv %s639_s12 }
 0x4b5   :  { %v641_v43 = vsub.f32 %v619_v30, %v640_v42 }
 0x4b7   :  { %644 = vperm.xlu1 %810, %v641_v43  }
 0x532   :  { %v645_v44 = vpop.permute.xlu1 %644 }
 0x533   :  { %v647_v45 = vadd.f32 %v645_v44, %v619_v30 }
 0x535   :  { %648 = vst [vmem:[#allocation10] sm:$0x3] %v647_v45 }
 0x536   :  { %959 = shalt.err (!%p956_p10)
}
 0x537   :  { %658 = dma.vmem_to_hbm [thread:$0]  %s656_s14, 32, %s1048_s4, [#allocation4]  }
 0x538   :  { %974 = dma.done.wait [#allocation4], 32  }
 0x539   :  { %975 = vsyncadd [#allocation4], 4294967264 }
 0x53a   :  { %662 = vsyncpa [#allocation3], 1 }
 0x53b   :  { %663 = vsyncpa [#allocation6], 1 }
 0x53c   :  { %664 = vsyncpa [#allocation9], 1 }
 0x53d   :  { %665 = vsyncpa [#allocation4], 1 }

</bundles_post_ra>
